<compile_context>
chip_gen: v7x
topology: tpu7x:2x2x1
jax: 0.10.0
libtpu: 0.0.40
codegen_flags: <defaults>
</compile_context>

<pallas_src>
import functools

import jax
import jax.numpy as jnp
from jax import lax
from jax.experimental import pallas as pl
from jax.experimental.pallas import tpu as pltpu


def _round_up(n, m):
    return ((n + m - 1) // m) * m


def _cdiv(a, b):
    return -(-a // b)


def _critic_kernel(x_ref, w1_ref, b1_ref, w2_ref, b2_ref, w3_ref, b3_ref, out_ref):
    # x tile: (TM, OBS_P) f32 -> bf16 for the MXU (cheap VPU cast, hidden
    # under the matmul/EUP work).
    x = x_ref[...].astype(jnp.bfloat16)

    # Layer 1: bf16 MXU matmul, f32 accumulation, f32 bias, bf16 tanh (EUP).
    a1 = jnp.dot(x, w1_ref[...], preferred_element_type=jnp.float32) + b1_ref[...]
    h1 = jnp.tanh(a1.astype(jnp.bfloat16))                  # (TM, H_P) bf16

    # Layer 2: same recipe; h1 is already bf16 so it feeds the MXU directly.
    a2 = jnp.dot(h1, w2_ref[...], preferred_element_type=jnp.float32) + b2_ref[...]
    h2 = jnp.tanh(a2.astype(jnp.bfloat16))                  # (TM, H_P) bf16

    # N=1 head, lane-dense: w3 (1, H_P) contracted with h2 (TM, H_P) along H
    # -> (1, TM).  The MXU has huge slack here and the result is natively
    # lane-major, so the writeback is an unmasked, lane-dense store.
    v = lax.dot_general(
        w3_ref[...], h2,
        dimension_numbers=(((1,), (1,)), ((), ())),
        preferred_element_type=jnp.float32,
    )                                                       # (1, TM) f32
    out_ref[...] = v + b3_ref[0, 0]                         # b3: SMEM scalar


def init_critic_params(key, obs_dim, hidden_size):
    """nn.Linear-style init U(-1/sqrt(fan_in), 1/sqrt(fan_in)).
    Logical (unpadded) params; weights stored (in, out), biases (1, out)."""
    k1, k2, k3, k4, k5, k6 = jax.random.split(key, 6)

    def lin(kw, kb, fan_in, fan_out):
        bound = 1.0 / jnp.sqrt(fan_in)
        w = jax.random.uniform(kw, (fan_in, fan_out), jnp.float32, -bound, bound)
        b = jax.random.uniform(kb, (1, fan_out), jnp.float32, -bound, bound)
        return w, b

    w1, b1 = lin(k1, k2, obs_dim, hidden_size)
    w2, b2 = lin(k3, k4, hidden_size, hidden_size)
    w3, b3 = lin(k5, k6, hidden_size, 1)
    return (w1, b1, w2, b2, w3, b3)


def prepare_params(params, obs_dim, hidden_size):
    """Zero-pad to lane-dense kernel shapes.  Padded weight/bias entries are 0,
    so tanh(0)=0 keeps the padding inert through every layer.  Weights go to
    bf16 (MXU-native); biases stay f32 (added to the f32 accumulators); the
    output head w3 is a (1, H_P) bf16 row; b3 is a (1, 1) f32 SMEM scalar."""
    w1, b1, w2, b2, w3, b3 = params
    obs_p = _round_up(max(obs_dim, 1), 8)
    hid_p = _round_up(max(hidden_size, 1), 128)

    w1p = (jnp.zeros((obs_p, hid_p), jnp.float32)
           .at[:obs_dim, :hidden_size].set(w1).astype(jnp.bfloat16))
    b1p = jnp.zeros((1, hid_p), jnp.float32).at[:, :hidden_size].set(b1)
    w2p = (jnp.zeros((hid_p, hid_p), jnp.float32)
           .at[:hidden_size, :hidden_size].set(w2).astype(jnp.bfloat16))
    b2p = jnp.zeros((1, hid_p), jnp.float32).at[:, :hidden_size].set(b2)
    w3p = (jnp.zeros((1, hid_p), jnp.float32)
           .at[0, :hidden_size].set(w3[:, 0]).astype(jnp.bfloat16))
    b3p = jnp.asarray(b3, jnp.float32).reshape(1, 1)
    return (w1p, b1p, w2p, b2p, w3p, b3p)


def _choose_row_tile(batch, block_rows):
    """128-aligned row tile (lane-dense out block), sized to minimize tail
    padding; >=2 tiles when there is enough work so v7x's two TensorCores can
    both take a shard of the "parallel" batch axis."""
    block_rows = max(128, _round_up(block_rows, 128))
    n_tiles = max(1, _cdiv(batch, block_rows))
    if batch >= 256:
        n_tiles = max(n_tiles, 2)
    tm = _round_up(_cdiv(batch, n_tiles), 128)
    padded_batch = _round_up(batch, tm)
    return tm, padded_batch


@functools.partial(
    jax.jit, static_argnames=("obs_dim", "block_rows", "single_buffer_weights")
)
def _critic_forward_impl(observation, padded_params, obs_dim, block_rows,
                         single_buffer_weights):
    w1, b1, w2, b2, w3r, b3 = padded_params
    obs_p, hid_p = w1.shape

    x = observation.reshape(-1, obs_dim)
    if x.dtype != jnp.float32:
        x = x.astype(jnp.float32)
    batch = x.shape[0]

    tm, padded_batch = _choose_row_tile(batch, block_rows)
    x_p = jnp.pad(x, ((0, padded_batch - batch), (0, obs_p - obs_dim)))
    grid = (padded_batch // tm,)

    # Constant-index (pinned) params: single-buffered when supported.
    def pinned(shape):
        if single_buffer_weights:
            return pl.BlockSpec(shape, lambda i: (0, 0), pipeline_mode=pl.Buffered(1))
        return pl.BlockSpec(shape, lambda i: (0, 0))

    in_specs = [
        pl.BlockSpec((tm, obs_p), lambda i: (i, 0)),            # x: tiled over batch
        pinned((obs_p, hid_p)),                                 # w1 (bf16, VMEM-resident)
        pinned((1, hid_p)),                                     # b1 (f32)
        pinned((hid_p, hid_p)),                                 # w2 (bf16)
        pinned((1, hid_p)),                                     # b2 (f32)
        pinned((1, hid_p)),                                     # w3 row (bf16)
        pl.BlockSpec(memory_space=pltpu.MemorySpace.SMEM),      # b3 scalar in SMEM
    ]
    out_spec = pl.BlockSpec((1, tm), lambda i: (0, i))          # lane-dense output

    # Explicit VMEM budget from the actual footprint (with headroom), so large
    # hidden sizes fit v5e's 16 MiB / v7x's 32 MiB scoped defaults.
    buf_factor = 1 if single_buffer_weights else 2
    param_bytes = buf_factor * (
        2 * (obs_p * hid_p + hid_p * hid_p + hid_p)             # bf16 w1, w2, w3
        + 4 * 2 * hid_p                                         # f32 b1, b2
    )
    io_bytes = 2 * (tm * obs_p * 4 + tm * 4)                    # 2x-buffered x + out tiles
    act_bytes = 4 * tm * hid_p * 4                              # h1/h2/accum temporaries
    vmem_limit = int(
        min(max(2 * (param_bytes + io_bytes + act_bytes) + (4 << 20), 32 << 20),
            48 << 20)
    )

    flops = 2.0 * padded_batch * (obs_p * hid_p + hid_p * hid_p + hid_p)
    bytes_accessed = (
        4.0 * padded_batch * (obs_p + 1)                        # x in, value out (f32)
        + 2.0 * (obs_p * hid_p + hid_p * hid_p + hid_p)         # bf16 weights
        + 4.0 * (2 * hid_p + 1)                                 # f32 biases
    )

    out = pl.pallas_call(
        _critic_kernel,
        out_shape=jax.ShapeDtypeStruct((1, padded_batch), jnp.float32),
        grid_spec=pltpu.PrefetchScalarGridSpec(
            num_scalar_prefetch=0,
            grid=grid,
            in_specs=in_specs,
            out_specs=out_spec,
        ),
        compiler_params=pltpu.CompilerParams(
            dimension_semantics=("parallel",),
            vmem_limit_bytes=vmem_limit,
        ),
        cost_estimate=pl.CostEstimate(
            flops=int(flops),
            transcendentals=int(2 * padded_batch * hid_p),
            bytes_accessed=int(bytes_accessed),
        ),
    )(x_p, w1, b1, w2, b2, w3r, b3)

    return out[0, :batch][:, None]                              # (batch, 1)


def critic_forward(observation, padded_params, obs_dim, block_rows=1024):
    """observation: any shape whose trailing dims flatten to obs_dim per row."""
    try:
        return _critic_forward_impl(observation, padded_params, obs_dim,
                                    block_rows, True)
    except Exception:
        # Fallback for runtimes that reject single-buffered (Buffered(1))
        # pinned inputs; identical numerics, default double-buffering.
        return _critic_forward_impl(observation, padded_params, obs_dim,
                                    block_rows, False)


if __name__ == "__main__":
    obs_dim = 3        # time, altitude, distance to finish
    hidden_size = 32
    batch = 8

    key = jax.random.PRNGKey(0)
    k_obs, k_param = jax.random.split(key)

    observation = jax.random.normal(k_obs, (batch, obs_dim), jnp.float32)
    params = init_critic_params(k_param, obs_dim, hidden_size)
    padded_params = prepare_params(params, obs_dim, hidden_size)

    value = critic_forward(observation, padded_params, obs_dim)
    value = jax.block_until_ready(value)

    # Pure-JAX f32 reference on the logical (unpadded) params.  The kernel runs
    # bf16 weights/activations (f32 accumulation), so tolerances are loosened
    # accordingly.
    w1, b1, w2, b2, w3, b3 = params
    x = observation.reshape(-1, obs_dim)
    ref = jnp.tanh(x @ w1 + b1)
    ref = jnp.tanh(ref @ w2 + b2)
    ref = ref @ w3 + b3

    assert value.shape == (batch, 1), value.shape
    max_err = float(jnp.max(jnp.abs(value - ref)))
    assert max_err < 2.5e-2, max_err
    print("KERNEL_OK")
</pallas_src>

<mosaic_0001>
module attributes {stable_mosaic.version = 11 : i64} {
  func.func @_critic_kernel(%arg0: i32, %arg1: memref<128x8xf32, #tpu.memory_space<vmem>>, %arg2: memref<8x128xbf16, #tpu.memory_space<vmem>>, %arg3: memref<1x128xf32, #tpu.memory_space<vmem>>, %arg4: memref<128x128xbf16, #tpu.memory_space<vmem>>, %arg5: memref<1x128xf32, #tpu.memory_space<vmem>>, %arg6: memref<1x128xbf16, #tpu.memory_space<vmem>>, %arg7: memref<1x1xf32, #tpu.memory_space<smem>>, %arg8: memref<1x128xf32, #tpu.memory_space<vmem>>) attributes {dimension_semantics = [#tpu.dimension_semantics<parallel>], iteration_bounds = array<i64: 1>, scalar_prefetch = 0 : i64, scratch_operands = 0 : i64, tpu.core_type = #tpu.core_type<tc>, window_params = [{transform_indices = @transform_0, window_bounds = array<i64: 128, 8>}, {pipeline_mode = #tpu.pipeline_mode<synchronous>, transform_indices = @transform_1, window_bounds = array<i64: 8, 128>}, {pipeline_mode = #tpu.pipeline_mode<synchronous>, transform_indices = @transform_2, window_bounds = array<i64: 1, 128>}, {pipeline_mode = #tpu.pipeline_mode<synchronous>, transform_indices = @transform_3, window_bounds = array<i64: 128, 128>}, {pipeline_mode = #tpu.pipeline_mode<synchronous>, transform_indices = @transform_4, window_bounds = array<i64: 1, 128>}, {pipeline_mode = #tpu.pipeline_mode<synchronous>, transform_indices = @transform_5, window_bounds = array<i64: 1, 128>}, {transform_indices = @transform_6, window_bounds = array<i64: 1, 1>}, {transform_indices = @transform_7, window_bounds = array<i64: 1, 128>}]} {
    %c0 = arith.constant 0 : index
    %c0_0 = arith.constant 0 : index
    %0 = vector.load %arg1[%c0, %c0_0] : memref<128x8xf32, #tpu.memory_space<vmem>>, vector<128x8xf32>
    %1 = arith.truncf %0 : vector<128x8xf32> to vector<128x8xbf16>
    %c0_1 = arith.constant 0 : index
    %c0_2 = arith.constant 0 : index
    %2 = vector.load %arg2[%c0_1, %c0_2] : memref<8x128xbf16, #tpu.memory_space<vmem>>, vector<8x128xbf16>
    %cst = arith.constant dense<0.000000e+00> : vector<128x128xf32>
    %3 = tpu.matmul %1, %2, %cst {dimension_numbers = #tpu.dot_dimension_numbers<[1], [0], [0], [1], [0, 0, 1, 1], [], []>} : vector<128x8xbf16>, vector<8x128xbf16>, vector<128x128xf32> -> vector<128x128xf32>
    %c0_3 = arith.constant 0 : index
    %c0_4 = arith.constant 0 : index
    %4 = vector.load %arg3[%c0_3, %c0_4] : memref<1x128xf32, #tpu.memory_space<vmem>>, vector<1x128xf32>
    %5 = vector.broadcast %4 : vector<1x128xf32> to vector<128x128xf32>
    %6 = arith.addf %3, %5 : vector<128x128xf32>
    %7 = arith.truncf %6 : vector<128x128xf32> to vector<128x128xbf16>
    %8 = math.tanh %7 : vector<128x128xbf16>
    %c0_5 = arith.constant 0 : index
    %c0_6 = arith.constant 0 : index
    %9 = vector.load %arg4[%c0_5, %c0_6] : memref<128x128xbf16, #tpu.memory_space<vmem>>, vector<128x128xbf16>
    %cst_7 = arith.constant dense<0.000000e+00> : vector<128x128xf32>
    %10 = tpu.matmul %8, %9, %cst_7 {dimension_numbers = #tpu.dot_dimension_numbers<[1], [0], [0], [1], [0, 0, 1, 1], [], []>} : vector<128x128xbf16>, vector<128x128xbf16>, vector<128x128xf32> -> vector<128x128xf32>
    %c0_8 = arith.constant 0 : index
    %c0_9 = arith.constant 0 : index
    %11 = vector.load %arg5[%c0_8, %c0_9] : memref<1x128xf32, #tpu.memory_space<vmem>>, vector<1x128xf32>
    %12 = vector.broadcast %11 : vector<1x128xf32> to vector<128x128xf32>
    %13 = arith.addf %10, %12 : vector<128x128xf32>
    %14 = arith.truncf %13 : vector<128x128xf32> to vector<128x128xbf16>
    %15 = math.tanh %14 : vector<128x128xbf16>
    %c0_10 = arith.constant 0 : index
    %c0_11 = arith.constant 0 : index
    %16 = vector.load %arg6[%c0_10, %c0_11] : memref<1x128xbf16, #tpu.memory_space<vmem>>, vector<1x128xbf16>
    %cst_12 = arith.constant dense<0.000000e+00> : vector<1x128xf32>
    %17 = tpu.matmul %16, %15, %cst_12 {dimension_numbers = #tpu.dot_dimension_numbers<[1], [1], [0], [0], [0, 0, 1, 0], [], []>} : vector<1x128xbf16>, vector<128x128xbf16>, vector<1x128xf32> -> vector<1x128xf32>
    %c0_13 = arith.constant 0 : index
    %c0_14 = arith.constant 0 : index
    %18 = memref.load %arg7[%c0_13, %c0_14] : memref<1x1xf32, #tpu.memory_space<smem>>
    %19 = vector.broadcast %18 : f32 to vector<1x128xf32>
    %20 = arith.addf %17, %19 : vector<1x128xf32>
    %c0_15 = arith.constant 0 : index
    %c0_16 = arith.constant 0 : index
    %21 = vector.load %arg8[%c0_15, %c0_16] : memref<1x128xf32, #tpu.memory_space<vmem>>, vector<1x128xf32>
    tpu.vector_store %arg8[%c0_15, %c0_16], %20 {strides = array<i32>} : memref<1x128xf32, #tpu.memory_space<vmem>>, vector<1x128xf32>,
    return
  }
  func.func @transform_0(%arg0: i32) -> (i32, i32) {
    %c0_i32 = arith.constant 0 : i32
    %c0_i32_0 = arith.constant 0 : i32
    return %arg0, %c0_i32 : i32, i32
  }
  func.func @transform_1(%arg0: i32) -> (i32, i32) {
    %c0_i32 = arith.constant 0 : i32
    %c0_i32_0 = arith.constant 0 : i32
    %c0_i32_1 = arith.constant 0 : i32
    return %c0_i32, %c0_i32_0 : i32, i32
  }
  func.func @transform_2(%arg0: i32) -> (i32, i32) {
    %c0_i32 = arith.constant 0 : i32
    %c0_i32_0 = arith.constant 0 : i32
    %c0_i32_1 = arith.constant 0 : i32
    return %c0_i32, %c0_i32_0 : i32, i32
  }
  func.func @transform_3(%arg0: i32) -> (i32, i32) {
    %c0_i32 = arith.constant 0 : i32
    %c0_i32_0 = arith.constant 0 : i32
    %c0_i32_1 = arith.constant 0 : i32
    return %c0_i32, %c0_i32_0 : i32, i32
  }
  func.func @transform_4(%arg0: i32) -> (i32, i32) {
    %c0_i32 = arith.constant 0 : i32
    %c0_i32_0 = arith.constant 0 : i32
    %c0_i32_1 = arith.constant 0 : i32
    return %c0_i32, %c0_i32_0 : i32, i32
  }
  func.func @transform_5(%arg0: i32) -> (i32, i32) {
    %c0_i32 = arith.constant 0 : i32
    %c0_i32_0 = arith.constant 0 : i32
    %c0_i32_1 = arith.constant 0 : i32
    return %c0_i32, %c0_i32_0 : i32, i32
  }
  func.func @transform_6(%arg0: i32) -> (i32, i32) {
    %c0_i32 = arith.constant 0 : i32
    %c0_i32_0 = arith.constant 0 : i32
    %c0_i32_1 = arith.constant 0 : i32
    return %c0_i32, %c0_i32_0 : i32, i32
  }
  func.func @transform_7(%arg0: i32) -> (i32, i32) {
    %c0_i32 = arith.constant 0 : i32
    %c0_i32_0 = arith.constant 0 : i32
    return %c0_i32, %arg0 : i32, i32
  }
}

module attributes {stable_mosaic.version = 11 : i64} {
  func.func @_critic_kernel(%arg0: i32, %arg1: memref<128x8xf32, #tpu.memory_space<vmem>>, %arg2: memref<8x128xbf16, #tpu.memory_space<vmem>>, %arg3: memref<1x128xf32, #tpu.memory_space<vmem>>, %arg4: memref<128x128xbf16, #tpu.memory_space<vmem>>, %arg5: memref<1x128xf32, #tpu.memory_space<vmem>>, %arg6: memref<1x128xbf16, #tpu.memory_space<vmem>>, %arg7: memref<1x1xf32, #tpu.memory_space<smem>>, %arg8: memref<1x128xf32, #tpu.memory_space<vmem>>) attributes {dimension_semantics = [#tpu.dimension_semantics<parallel>], iteration_bounds = array<i64: 1>, scalar_prefetch = 0 : i64, scratch_operands = 0 : i64, tpu.core_type = #tpu.core_type<tc>, window_params = [{transform_indices = @transform_0, window_bounds = array<i64: 128, 8>}, {pipeline_mode = #tpu.pipeline_mode<synchronous>, transform_indices = @transform_1, window_bounds = array<i64: 8, 128>}, {pipeline_mode = #tpu.pipeline_mode<synchronous>, transform_indices = @transform_2, window_bounds = array<i64: 1, 128>}, {pipeline_mode = #tpu.pipeline_mode<synchronous>, transform_indices = @transform_3, window_bounds = array<i64: 128, 128>}, {pipeline_mode = #tpu.pipeline_mode<synchronous>, transform_indices = @transform_4, window_bounds = array<i64: 1, 128>}, {pipeline_mode = #tpu.pipeline_mode<synchronous>, transform_indices = @transform_5, window_bounds = array<i64: 1, 128>}, {transform_indices = @transform_6, window_bounds = array<i64: 1, 1>}, {transform_indices = @transform_7, window_bounds = array<i64: 1, 128>}]} {
    %c0 = arith.constant 0 : index
    %c0_0 = arith.constant 0 : index
    %0 = vector.load %arg1[%c0, %c0_0] : memref<128x8xf32, #tpu.memory_space<vmem>>, vector<128x8xf32>
    %1 = arith.truncf %0 : vector<128x8xf32> to vector<128x8xbf16>
    %c0_1 = arith.constant 0 : index
    %c0_2 = arith.constant 0 : index
    %2 = vector.load %arg2[%c0_1, %c0_2] : memref<8x128xbf16, #tpu.memory_space<vmem>>, vector<8x128xbf16>
    %cst = arith.constant dense<0.000000e+00> : vector<128x128xf32>
    %3 = tpu.matmul %1, %2, %cst {dimension_numbers = #tpu.dot_dimension_numbers<[1], [0], [0], [1], [0, 0, 1, 1], [], []>} : vector<128x8xbf16>, vector<8x128xbf16>, vector<128x128xf32> -> vector<128x128xf32>
    %c0_3 = arith.constant 0 : index
    %c0_4 = arith.constant 0 : index
    %4 = vector.load %arg3[%c0_3, %c0_4] : memref<1x128xf32, #tpu.memory_space<vmem>>, vector<1x128xf32>
    %5 = vector.broadcast %4 : vector<1x128xf32> to vector<128x128xf32>
    %6 = arith.addf %3, %5 : vector<128x128xf32>
    %7 = arith.truncf %6 : vector<128x128xf32> to vector<128x128xbf16>
    %8 = math.tanh %7 : vector<128x128xbf16>
    %c0_5 = arith.constant 0 : index
    %c0_6 = arith.constant 0 : index
    %9 = vector.load %arg4[%c0_5, %c0_6] : memref<128x128xbf16, #tpu.memory_space<vmem>>, vector<128x128xbf16>
    %cst_7 = arith.constant dense<0.000000e+00> : vector<128x128xf32>
    %10 = tpu.matmul %8, %9, %cst_7 {dimension_numbers = #tpu.dot_dimension_numbers<[1], [0], [0], [1], [0, 0, 1, 1], [], []>} : vector<128x128xbf16>, vector<128x128xbf16>, vector<128x128xf32> -> vector<128x128xf32>
    %c0_8 = arith.constant 0 : index
    %c0_9 = arith.constant 0 : index
    %11 = vector.load %arg5[%c0_8, %c0_9] : memref<1x128xf32, #tpu.memory_space<vmem>>, vector<1x128xf32>
    %12 = vector.broadcast %11 : vector<1x128xf32> to vector<128x128xf32>
    %13 = arith.addf %10, %12 : vector<128x128xf32>
    %14 = arith.truncf %13 : vector<128x128xf32> to vector<128x128xbf16>
    %15 = math.tanh %14 : vector<128x128xbf16>
    %c0_10 = arith.constant 0 : index
    %c0_11 = arith.constant 0 : index
    %16 = vector.load %arg6[%c0_10, %c0_11] : memref<1x128xbf16, #tpu.memory_space<vmem>>, vector<1x128xbf16>
    %cst_12 = arith.constant dense<0.000000e+00> : vector<1x128xf32>
    %17 = tpu.matmul %16, %15, %cst_12 {dimension_numbers = #tpu.dot_dimension_numbers<[1], [1], [0], [0], [0, 0, 1, 0], [], []>} : vector<1x128xbf16>, vector<128x128xbf16>, vector<1x128xf32> -> vector<1x128xf32>
    %c0_13 = arith.constant 0 : index
    %c0_14 = arith.constant 0 : index
    %18 = memref.load %arg7[%c0_13, %c0_14] : memref<1x1xf32, #tpu.memory_space<smem>>
    %19 = vector.broadcast %18 : f32 to vector<1x128xf32>
    %20 = arith.addf %17, %19 : vector<1x128xf32>
    %c0_15 = arith.constant 0 : index
    %c0_16 = arith.constant 0 : index
    %21 = vector.load %arg8[%c0_15, %c0_16] : memref<1x128xf32, #tpu.memory_space<vmem>>, vector<1x128xf32>
    tpu.vector_store %arg8[%c0_15, %c0_16], %20 {strides = array<i32>} : memref<1x128xf32, #tpu.memory_space<vmem>>, vector<1x128xf32>,
    return
  }
  func.func @transform_0(%arg0: i32) -> (i32, i32) {
    %c0_i32 = arith.constant 0 : i32
    %c0_i32_0 = arith.constant 0 : i32
    return %arg0, %c0_i32 : i32, i32
  }
  func.func @transform_1(%arg0: i32) -> (i32, i32) {
    %c0_i32 = arith.constant 0 : i32
    %c0_i32_0 = arith.constant 0 : i32
    %c0_i32_1 = arith.constant 0 : i32
    return %c0_i32, %c0_i32_0 : i32, i32
  }
  func.func @transform_2(%arg0: i32) -> (i32, i32) {
    %c0_i32 = arith.constant 0 : i32
    %c0_i32_0 = arith.constant 0 : i32
    %c0_i32_1 = arith.constant 0 : i32
    return %c0_i32, %c0_i32_0 : i32, i32
  }
  func.func @transform_3(%arg0: i32) -> (i32, i32) {
    %c0_i32 = arith.constant 0 : i32
    %c0_i32_0 = arith.constant 0 : i32
    %c0_i32_1 = arith.constant 0 : i32
    return %c0_i32, %c0_i32_0 : i32, i32
  }
  func.func @transform_4(%arg0: i32) -> (i32, i32) {
    %c0_i32 = arith.constant 0 : i32
    %c0_i32_0 = arith.constant 0 : i32
    %c0_i32_1 = arith.constant 0 : i32
    return %c0_i32, %c0_i32_0 : i32, i32
  }
  func.func @transform_5(%arg0: i32) -> (i32, i32) {
    %c0_i32 = arith.constant 0 : i32
    %c0_i32_0 = arith.constant 0 : i32
    %c0_i32_1 = arith.constant 0 : i32
    return %c0_i32, %c0_i32_0 : i32, i32
  }
  func.func @transform_6(%arg0: i32) -> (i32, i32) {
    %c0_i32 = arith.constant 0 : i32
    %c0_i32_0 = arith.constant 0 : i32
    %c0_i32_1 = arith.constant 0 : i32
    return %c0_i32, %c0_i32_0 : i32, i32
  }
  func.func @transform_7(%arg0: i32) -> (i32, i32) {
    %c0_i32 = arith.constant 0 : i32
    %c0_i32_0 = arith.constant 0 : i32
    return %c0_i32, %arg0 : i32, i32
  }
}

</mosaic_0001>

<bundles_post_ra>
// kernel: _critic_forward_impl.1
= control target key start
LH: loop header
LB: loop body
LE: loop exit
PB: predicated region body
PF: predicated region fallthrough
CT: control target
= control target key end

     0   :  { %vm85_vm0 = vcmask 1043456   ;;  %vm60_vm1 = vcmask 64512   ;;  %vm600_vm2 = vmmov 0   ;;  %s748_s1 = inlined_call_operand.vmem [shape: bf16[8,128], index: 1, kind: input, shape index: {}]   ;;  %s749_s0 = inlined_call_operand.vmem [shape: f32[128,8], index: 0, kind: input, shape index: {}]   ;;  %s750_s3 = inlined_call_operand.vmem [shape: bf16[128,128], index: 3, kind: input, shape index: {}]   ;;  %s751_s2 = inlined_call_operand.vmem [shape: f32[1,128], index: 2, kind: input, shape index: {}]   ;;  %s752_s4 = inlined_call_operand.vmem [shape: f32[1,128], index: 4, kind: input, shape index: {}]   ;;  %s753_s5 = inlined_call_operand.vmem [shape: bf16[1,128], index: 5, kind: input, shape index: {}]   ;;  %s754_s6 = inlined_call_operand.<no memory space> [shape: f32[1,1], index: 6, kind: input, shape index: {}]   ;;  %s755_s7 = inlined_call_operand.vmem [shape: f32[1,128], index: 7, kind: output, shape index: {}]  }
   0x1   :  { %v52_v0 = vld [vmem:[%s748_s1] sm:$0xf]  ;;  %v29_v2 = vld [vmem:[%s749_s0 + $0x8] sm:$0xff]  ;;  %v30_v5 = vld [vmem:[%s749_s0 + $0x10] sm:$0xff] }
   0x2   :  { %v28_v1 = vld [vmem:[%s749_s0] sm:$0xff]  ;;  %556 = vmatprep.subr.msk.bf16.mxu1 %vm85_vm0, %v52_v0  ;;  %v87_v3 = vsel %vm85_vm0, %v52_v0, 0  ;;  %v31_v6 = vld [vmem:[%s749_s0 + $0x18] sm:$0xff]  ;;  %v33_v9 = vld [vmem:[%s749_s0 + $0x28] sm:$0xff] }
   0x3   :  { %v44_v4 = vpack.c.bf16 %v29_v2, %v28_v1  ;;  %v32_v7 = vld [vmem:[%s749_s0 + $0x20] sm:$0xff]  ;;  %487 = vmatpush3.bf16.msra.mxu1 %v87_v3  ;;  %v45_v8 = vpack.c.bf16 %v31_v6, %v30_v5  ;;  %v34_v11 = vld [vmem:[%s749_s0 + $0x30] sm:$0xff]  ;;  %v35_v12 = vld [vmem:[%s749_s0 + $0x38] sm:$0xff] }
   0x4   :  { %v46_v10 = vpack.c.bf16 %v33_v9, %v32_v7  ;;  %v36_v13 = vld [vmem:[%s749_s0 + $0x40] sm:$0xff]  ;;  %v37_v14 = vld [vmem:[%s749_s0 + $0x48] sm:$0xff]  ;;  %v47_v17 = vpack.c.bf16 %v35_v12, %v34_v11  ;;  %v561_v18 = vld [vmem:[%s750_s3 + $0x10] sm:$0xff]  }
   0x5   :  { %488 = vmatprep.mubr.msk.bf16.mxu1 %vm60_vm1, %v44_v4  ;;  %v559_v15 = vld [vmem:[%s750_s3] sm:$0xff]   ;;  %v560_v16 = vld [vmem:[%s750_s3 + $0x8] sm:$0xff]   ;;  %v48_v19 = vpack.c.bf16 %v37_v14, %v36_v13  ;;  %v38_v20 = vld [vmem:[%s749_s0 + $0x50] sm:$0xff] }
   0x6   :  { %489 = vmatmul.mubr.msk.bf16.vlgmr.msra.gmra.mrb[0].mxu1 %vm60_vm1, %v45_v8  ;;  %504 = vmatprep.subr.bf16.mxu1 %v559_v15  ;;  %v39_v21 = vld [vmem:[%s749_s0 + $0x58] sm:$0xff]  ;;  %v40_v22 = vld [vmem:[%s749_s0 + $0x60] sm:$0xff]  ;;  %v41_v23 = vld [vmem:[%s749_s0 + $0x68] sm:$0xff] }
   0x7   :  { %492 = vmatprep.mubr.msk.bf16.mxu1 %vm60_vm1, %v46_v10  ;;  %505 = vmatpush3.bf16.msra.mxu1 %v559_v15  ;;  %v49_v24 = vpack.c.bf16 %v39_v21, %v38_v20  ;;  %v50_v25 = vpack.c.bf16 %v41_v23, %v40_v22  ;;  %v42_v26 = vld [vmem:[%s749_s0 + $0x70] sm:$0xff]  ;;  %v43_v27 = vld [vmem:[%s749_s0 + $0x78] sm:$0xff]  ;;  %v563_v30 = vld [vmem:[%s750_s3 + $0x20] sm:$0xff]  }
   0x8   :  { %506 = vmatprep.subr.bf16.mxu1 %v560_v16  ;;  %v51_v28 = vpack.c.bf16 %v43_v27, %v42_v26  ;;  %v562_v29 = vld [vmem:[%s750_s3 + $0x18] sm:$0xff]   ;;  %v564_v31 = vld [vmem:[%s750_s3 + $0x28] sm:$0xff]   ;;  %v565_v32 = vld [vmem:[%s750_s3 + $0x30] sm:$0xff]  }
   0x9   :  { %v566_v33 = vld [vmem:[%s750_s3 + $0x38] sm:$0xff]   ;;  %v434_v35 = vld [vmem:[%s751_s2] ss:$0 sm:$0xff] }
   0xa   :  { %v443_v21 = vld [vmem:[%s752_s4] ss:$0 sm:$0xff] }
   0xb   :  { %507 = vmatpush3.bf16.msra.mxu1 %v560_v16 }
   0xc   :  { %508 = vmatprep.subr.bf16.mxu1 %v561_v18 }
   0xe   :  { %493 = vmatmul.mubr.msk.bf16.gmra.mrb[4].mxu1 %vm60_vm1, %v47_v17 }
   0xf   :  { %496 = vmatprep.mubr.msk.bf16.mxu1 %vm60_vm1, %v48_v19  ;;  %509 = vmatpush3.bf16.msra.mxu1 %v561_v18  ;;  %v599_v19 = vmov 0.0  }
  0x10   :  { %510 = vmatprep.subr.bf16.mxu1 %v562_v29  ;;  %536 = vmatprep.subr.bf16.mxu0 %v599_v19 }
  0x11   :  { %552 = vmatprep.mubr.msk.bf16.mxu0 %vm600_vm2, %v599_v19 }
  0x13   :  { %511 = vmatpush3.bf16.msra.mxu1 %v562_v29 }
  0x14   :  { %512 = vmatprep.subr.bf16.mxu1 %v563_v30 }
  0x16   :  { %497 = vmatmul.mubr.msk.bf16.gmra.mrb[8].mxu1 %vm60_vm1, %v49_v24 }
  0x17   :  { %500 = vmatprep.mubr.msk.bf16.mxu1 %vm60_vm1, %v50_v25  ;;  %513 = vmatpush3.bf16.msra.mxu1 %v563_v30 }
  0x18   :  { %514 = vmatprep.subr.bf16.mxu1 %v564_v31 }
  0x1b   :  { %515 = vmatpush3.bf16.msra.mxu1 %v564_v31 }
  0x1c   :  { %516 = vmatprep.subr.bf16.mxu1 %v565_v32 }
  0x1e   :  { %501 = vmatmul.mubr.msk.bf16.gmra.mrb[12].mxu1 %vm60_vm1, %v51_v28 }
  0x1f   :  { %517 = vmatpush3.bf16.msra.mxu1 %v565_v32 }
  0x20   :  { %518 = vmatprep.subr.bf16.mxu1 %v566_v33 }
  0x23   :  { %519 = vmatpush3.bf16.msra.mxu1 %v566_v33 }
  0xd9   :  { %v490_v34 = vpop.f32.mrb[0].mxu1 }
  0xda   :  { %v123_v36 = vpop.f32.mrb[1].mxu1  ;;  %v132_v38 = vadd.f32 %v490_v34, %v434_v35 }
  0xdb   :  { %v491_v37 = vpop.f32.mrb[2].mxu1  ;;  %v124_v41 = vadd.f32 %v434_v35, %v123_v36 }
  0xdc   :  { %v135_v39 = vadd.f32 %v491_v37, %v434_v35  ;;  %v126_v40 = vpop.f32.mrb[3].mxu1 }
  0xdd   :  { %v127_v42 = vadd.f32 %v434_v35, %v126_v40 }
  0xde   :  { %v187_v43 = vpack.c.bf16 %v135_v39, %v132_v38 }
  0xdf   :  { %v186_v44 = vpack.c.bf16 %v127_v42, %v124_v41 }
  0xe1   :  { %567 = vtanh.bf16 %v186_v44  ;;  %v494_v45 = vpop.f32.mrb[4].mxu1 }
  0xe2   :  { %569 = vtanh.bf16 %v187_v43  ;;  %v148_v46 = vadd.f32 %v494_v45, %v434_v35  ;;  %v139_v47 = vpop.f32.mrb[5].mxu1 }
  0xe3   :  { %v140_v48 = vadd.f32 %v434_v35, %v139_v47  ;;  %v495_v49 = vpop.f32.mrb[6].mxu1 }
  0xe4   :  { %v151_v50 = vadd.f32 %v495_v49, %v434_v35  ;;  %v142_v51 = vpop.f32.mrb[7].mxu1 }
  0xe5   :  { %v143_v52 = vadd.f32 %v434_v35, %v142_v51 }
  0xe6   :  { %v189_v53 = vpack.c.bf16 %v151_v50, %v148_v46 }
  0xe7   :  { %v188_v54 = vpack.c.bf16 %v143_v52, %v140_v48 }
  0xe8   :  { %571 = vtanh.bf16 %v189_v53 }
  0xe9   :  { %573 = vtanh.bf16 %v188_v54  ;;  %v498_v55 = vpop.f32.mrb[8].mxu1 }
  0xea   :  { %v164_v56 = vadd.f32 %v498_v55, %v434_v35  ;;  %v155_v57 = vpop.f32.mrb[9].mxu1 }
  0xeb   :  { %v156_v58 = vadd.f32 %v434_v35, %v155_v57  ;;  %v499_v59 = vpop.f32.mrb[10].mxu1 }
  0xec   :  { %v568_v60 = vpop.eup %567  ;;  %v167_v61 = vadd.f32 %v499_v59, %v434_v35  ;;  %v158_v62 = vpop.f32.mrb[11].mxu1 }
  0xed   :  { %v570_v63 = vpop.eup %569  ;;  %520 = vmatprep.mubr.bf16.mxu1 %v568_v60  ;;  %v159_v0 = vadd.f32 %v434_v35, %v158_v62 }
  0xee   :  { %521 = vmatmul.mubr.bf16.vlgmr.msra.gmra.mrb[16].mxu1 %v570_v63  ;;  %v191_v1 = vpack.c.bf16 %v167_v61, %v164_v56 }
  0xef   :  { %v190_v2 = vpack.c.bf16 %v159_v0, %v156_v58 }
  0xf0   :  { %575 = vtanh.bf16 %v191_v1 }
  0xf1   :  { %577 = vtanh.bf16 %v190_v2  ;;  %v502_v3 = vpop.f32.mrb[12].mxu1 }
  0xf2   :  { %v180_v4 = vadd.f32 %v502_v3, %v434_v35  ;;  %v171_v5 = vpop.f32.mrb[13].mxu1 }
  0xf3   :  { %v572_v6 = vpop.eup %571  ;;  %v172_v7 = vadd.f32 %v434_v35, %v171_v5  ;;  %v503_v8 = vpop.f32.mrb[14].mxu1  ;;  %v386_v5 = vld [vmem:[%s753_s5] sm:$0x1] }
  0xf4   :  { %v574_v9 = vpop.eup %573  ;;  %v183_v10 = vadd.f32 %v503_v8, %v434_v35  ;;  %v174_v11 = vpop.f32.mrb[15].mxu1 }
  0xf5   :  { %524 = vmatprep.mubr.bf16.mxu1 %v574_v9  ;;  %v175_v12 = vadd.f32 %v434_v35, %v174_v11 }
  0xf6   :  { %525 = vmatmul.mubr.bf16.gmra.mrb[20].mxu1 %v572_v6  ;;  %v193_v13 = vpack.c.bf16 %v183_v10, %v180_v4  ;;  %v388_v6 = vstv %s754_s6 }
  0xf7   :  { %v192_v14 = vpack.c.bf16 %v175_v12, %v172_v7 }
  0xf8   :  { %579 = vtanh.bf16 %v193_v13 }
  0xf9   :  { %581 = vtanh.bf16 %v192_v14 }
  0xfb   :  { %v576_v15 = vpop.eup %575 }
  0xfc   :  { %v578_v16 = vpop.eup %577 }
  0xfd   :  { %528 = vmatprep.mubr.bf16.mxu1 %v578_v16 }
  0xfe   :  { %529 = vmatmul.mubr.bf16.gmra.mrb[24].mxu1 %v576_v15 }
 0x103   :  { %v580_v17 = vpop.eup %579 }
 0x104   :  { %v582_v18 = vpop.eup %581 }
 0x105   :  { %532 = vmatprep.mubr.bf16.mxu1 %v582_v18 }
 0x106   :  { %533 = vmatmul.mubr.bf16.gmra.mrb[28].mxu1 %v580_v17 }
 0x1c1   :  { %v522_v20 = vpop.f32.mrb[16].mxu1 }
 0x1c2   :  { %v307_v22 = vpop.f32.mrb[17].mxu1  ;;  %v316_v24 = vadd.f32 %v522_v20, %v443_v21 }
 0x1c3   :  { %v523_v23 = vpop.f32.mrb[18].mxu1  ;;  %v308_v27 = vadd.f32 %v443_v21, %v307_v22 }
 0x1c4   :  { %v319_v25 = vadd.f32 %v523_v23, %v443_v21  ;;  %v310_v26 = vpop.f32.mrb[19].mxu1 }
 0x1c5   :  { %v311_v28 = vadd.f32 %v443_v21, %v310_v26 }
 0x1c6   :  { %v371_v29 = vpack.c.bf16 %v319_v25, %v316_v24 }
 0x1c7   :  { %v370_v30 = vpack.c.bf16 %v311_v28, %v308_v27 }
 0x1c9   :  { %583 = vtanh.bf16 %v370_v30  ;;  %v526_v31 = vpop.f32.mrb[20].mxu1 }
 0x1ca   :  { %v332_v32 = vadd.f32 %v526_v31, %v443_v21  ;;  %v323_v33 = vpop.f32.mrb[21].mxu1  ;;  %585 = vtanh.bf16 %v371_v29 }
 0x1cb   :  { %v324_v34 = vadd.f32 %v443_v21, %v323_v33  ;;  %v527_v35 = vpop.f32.mrb[22].mxu1 }
 0x1cc   :  { %v335_v36 = vadd.f32 %v527_v35, %v443_v21  ;;  %v326_v37 = vpop.f32.mrb[23].mxu1 }
 0x1cd   :  { %v327_v38 = vadd.f32 %v443_v21, %v326_v37 }
 0x1ce   :  { %v373_v39 = vpack.c.bf16 %v335_v36, %v332_v32 }
 0x1cf   :  { %v372_v40 = vpack.c.bf16 %v327_v38, %v324_v34 }
 0x1d1   :  { %v530_v41 = vpop.f32.mrb[24].mxu1  ;;  %587 = vtanh.bf16 %v372_v40 }
 0x1d2   :  { %v348_v42 = vadd.f32 %v530_v41, %v443_v21  ;;  %v339_v43 = vpop.f32.mrb[25].mxu1  ;;  %589 = vtanh.bf16 %v373_v39 }
 0x1d3   :  { %v340_v44 = vadd.f32 %v443_v21, %v339_v43  ;;  %v531_v45 = vpop.f32.mrb[26].mxu1 }
 0x1d4   :  { %v584_v46 = vpop.eup %583  ;;  %v351_v47 = vadd.f32 %v531_v45, %v443_v21  ;;  %v342_v48 = vpop.f32.mrb[27].mxu1 }
 0x1d5   :  { %537 = vmatpush3.bf16.xpose.msra.mxu0 %v584_v46  ;;  %v343_v49 = vadd.f32 %v443_v21, %v342_v48  ;;  %v586_v57 = vpop.eup %585 }
 0x1d6   :  { %v375_v50 = vpack.c.bf16 %v351_v47, %v348_v42  ;;  %538 = vmatprep.subr.bf16.mxu0 %v599_v19 }
 0x1d7   :  { %v374_v51 = vpack.c.bf16 %v343_v49, %v340_v44 }
 0x1d9   :  { %v534_v52 = vpop.f32.mrb[28].mxu1  ;;  %591 = vtanh.bf16 %v374_v51 }
 0x1da   :  { %v364_v53 = vadd.f32 %v534_v52, %v443_v21  ;;  %v355_v54 = vpop.f32.mrb[29].mxu1  ;;  %593 = vtanh.bf16 %v375_v50 }
 0x1db   :  { %v356_v55 = vadd.f32 %v443_v21, %v355_v54  ;;  %v535_v56 = vpop.f32.mrb[30].mxu1 }
 0x1dc   :  { %v367_v58 = vadd.f32 %v535_v56, %v443_v21  ;;  %v358_v59 = vpop.f32.mrb[31].mxu1  ;;  %v588_v63 = vpop.eup %587 }
 0x1dd   :  { %539 = vmatpush3.bf16.xpose.msra.mxu0 %v586_v57  ;;  %v359_v60 = vadd.f32 %v443_v21, %v358_v59  ;;  %v590_v0 = vpop.eup %589 }
 0x1de   :  { %540 = vmatprep.subr.bf16.mxu0 %v599_v19  ;;  %v377_v61 = vpack.c.bf16 %v367_v58, %v364_v53 }
 0x1df   :  { %v376_v62 = vpack.c.bf16 %v359_v60, %v356_v55 }
 0x1e1   :  { %595 = vtanh.bf16 %v376_v62 }
 0x1e2   :  { %597 = vtanh.bf16 %v377_v61 }
 0x1e4   :  { %v592_v1 = vpop.eup %591 }
 0x1e5   :  { %541 = vmatpush3.bf16.xpose.msra.mxu0 %v588_v63  ;;  %v594_v2 = vpop.eup %593 }
 0x1e6   :  { %542 = vmatprep.subr.bf16.mxu0 %v599_v19 }
 0x1ec   :  { %v596_v3 = vpop.eup %595 }
 0x1ed   :  { %543 = vmatpush3.bf16.xpose.msra.mxu0 %v590_v0  ;;  %v598_v4 = vpop.eup %597 }
 0x1ee   :  { %544 = vmatprep.subr.bf16.mxu0 %v599_v19 }
 0x1f5   :  { %545 = vmatpush3.bf16.xpose.msra.mxu0 %v592_v1 }
 0x1f6   :  { %546 = vmatprep.subr.bf16.mxu0 %v599_v19 }
 0x1fd   :  { %547 = vmatpush3.bf16.xpose.msra.mxu0 %v594_v2 }
 0x1fe   :  { %548 = vmatprep.subr.bf16.mxu0 %v599_v19 }
 0x205   :  { %549 = vmatpush3.bf16.xpose.msra.mxu0 %v596_v3 }
 0x206   :  { %550 = vmatprep.subr.bf16.mxu0 %v599_v19 }
 0x20d   :  { %551 = vmatpush3.bf16.xpose.msra.mxu0 %v598_v4 }
 0x214   :  { %553 = vmatmul.mubr.bf16.vlgmr.msra.gmra.mrb[0].mxu0 %v386_v5 }
 0x2e7   :  { %v423_v7 = vpop.f32.mrb[0].mxu0 }
 0x2e8   :  { %v424_v8 = vadd.f32 %v423_v7, %v388_v6  ;;  %v554_v9 = vpop.f32.mrb[1].mxu0 }
 0x2e9   :  { %v426_v10 = vpop.f32.mrb[2].mxu0 }
 0x2ea   :  { %429 = vst [vmem:[%s755_s7] sm:$0x1] %v424_v8  ;;  %v555_v11 = vpop.f32.mrb[3].mxu0 }

// kernel: _critic_forward_impl.1
= control target key start
LH: loop header
LB: loop body
LE: loop exit
PB: predicated region body
PF: predicated region fallthrough
CT: control target
= control target key end

     0   :  { %vm85_vm0 = vcmask 1043456   ;;  %vm60_vm1 = vcmask 64512   ;;  %vm600_vm2 = vmmov 0   ;;  %s748_s1 = inlined_call_operand.vmem [shape: bf16[8,128], index: 1, kind: input, shape index: {}]   ;;  %s749_s0 = inlined_call_operand.vmem [shape: f32[128,8], index: 0, kind: input, shape index: {}]   ;;  %s750_s3 = inlined_call_operand.vmem [shape: bf16[128,128], index: 3, kind: input, shape index: {}]   ;;  %s751_s2 = inlined_call_operand.vmem [shape: f32[1,128], index: 2, kind: input, shape index: {}]   ;;  %s752_s4 = inlined_call_operand.vmem [shape: f32[1,128], index: 4, kind: input, shape index: {}]   ;;  %s753_s5 = inlined_call_operand.vmem [shape: bf16[1,128], index: 5, kind: input, shape index: {}]   ;;  %s754_s6 = inlined_call_operand.<no memory space> [shape: f32[1,1], index: 6, kind: input, shape index: {}]   ;;  %s755_s7 = inlined_call_operand.vmem [shape: f32[1,128], index: 7, kind: output, shape index: {}]  }
   0x1   :  { %v52_v0 = vld [vmem:[%s748_s1] sm:$0xf]  ;;  %v29_v2 = vld [vmem:[%s749_s0 + $0x8] sm:$0xff]  ;;  %v30_v5 = vld [vmem:[%s749_s0 + $0x10] sm:$0xff] }
   0x2   :  { %v28_v1 = vld [vmem:[%s749_s0] sm:$0xff]  ;;  %556 = vmatprep.subr.msk.bf16.mxu1 %vm85_vm0, %v52_v0  ;;  %v87_v3 = vsel %vm85_vm0, %v52_v0, 0  ;;  %v31_v6 = vld [vmem:[%s749_s0 + $0x18] sm:$0xff]  ;;  %v33_v9 = vld [vmem:[%s749_s0 + $0x28] sm:$0xff] }
   0x3   :  { %v44_v4 = vpack.c.bf16 %v29_v2, %v28_v1  ;;  %v32_v7 = vld [vmem:[%s749_s0 + $0x20] sm:$0xff]  ;;  %487 = vmatpush3.bf16.msra.mxu1 %v87_v3  ;;  %v45_v8 = vpack.c.bf16 %v31_v6, %v30_v5  ;;  %v34_v11 = vld [vmem:[%s749_s0 + $0x30] sm:$0xff]  ;;  %v35_v12 = vld [vmem:[%s749_s0 + $0x38] sm:$0xff] }
   0x4   :  { %v46_v10 = vpack.c.bf16 %v33_v9, %v32_v7  ;;  %v36_v13 = vld [vmem:[%s749_s0 + $0x40] sm:$0xff]  ;;  %v37_v14 = vld [vmem:[%s749_s0 + $0x48] sm:$0xff]  ;;  %v47_v17 = vpack.c.bf16 %v35_v12, %v34_v11  ;;  %v561_v18 = vld [vmem:[%s750_s3 + $0x10] sm:$0xff]  }
   0x5   :  { %488 = vmatprep.mubr.msk.bf16.mxu1 %vm60_vm1, %v44_v4  ;;  %v559_v15 = vld [vmem:[%s750_s3] sm:$0xff]   ;;  %v560_v16 = vld [vmem:[%s750_s3 + $0x8] sm:$0xff]   ;;  %v48_v19 = vpack.c.bf16 %v37_v14, %v36_v13  ;;  %v38_v20 = vld [vmem:[%s749_s0 + $0x50] sm:$0xff] }
   0x6   :  { %489 = vmatmul.mubr.msk.bf16.vlgmr.msra.gmra.mrb[0].mxu1 %vm60_vm1, %v45_v8  ;;  %504 = vmatprep.subr.bf16.mxu1 %v559_v15  ;;  %v39_v21 = vld [vmem:[%s749_s0 + $0x58] sm:$0xff]  ;;  %v40_v22 = vld [vmem:[%s749_s0 + $0x60] sm:$0xff]  ;;  %v41_v23 = vld [vmem:[%s749_s0 + $0x68] sm:$0xff] }
   0x7   :  { %492 = vmatprep.mubr.msk.bf16.mxu1 %vm60_vm1, %v46_v10  ;;  %505 = vmatpush3.bf16.msra.mxu1 %v559_v15  ;;  %v49_v24 = vpack.c.bf16 %v39_v21, %v38_v20  ;;  %v50_v25 = vpack.c.bf16 %v41_v23, %v40_v22  ;;  %v42_v26 = vld [vmem:[%s749_s0 + $0x70] sm:$0xff]  ;;  %v43_v27 = vld [vmem:[%s749_s0 + $0x78] sm:$0xff]  ;;  %v563_v30 = vld [vmem:[%s750_s3 + $0x20] sm:$0xff]  }
   0x8   :  { %506 = vmatprep.subr.bf16.mxu1 %v560_v16  ;;  %v51_v28 = vpack.c.bf16 %v43_v27, %v42_v26  ;;  %v562_v29 = vld [vmem:[%s750_s3 + $0x18] sm:$0xff]   ;;  %v564_v31 = vld [vmem:[%s750_s3 + $0x28] sm:$0xff]   ;;  %v565_v32 = vld [vmem:[%s750_s3 + $0x30] sm:$0xff]  }
   0x9   :  { %v566_v33 = vld [vmem:[%s750_s3 + $0x38] sm:$0xff]   ;;  %v434_v35 = vld [vmem:[%s751_s2] ss:$0 sm:$0xff] }
   0xa   :  { %v443_v21 = vld [vmem:[%s752_s4] ss:$0 sm:$0xff] }
   0xb   :  { %507 = vmatpush3.bf16.msra.mxu1 %v560_v16 }
   0xc   :  { %508 = vmatprep.subr.bf16.mxu1 %v561_v18 }
   0xe   :  { %493 = vmatmul.mubr.msk.bf16.gmra.mrb[4].mxu1 %vm60_vm1, %v47_v17 }
   0xf   :  { %496 = vmatprep.mubr.msk.bf16.mxu1 %vm60_vm1, %v48_v19  ;;  %509 = vmatpush3.bf16.msra.mxu1 %v561_v18  ;;  %v599_v19 = vmov 0.0  }
  0x10   :  { %510 = vmatprep.subr.bf16.mxu1 %v562_v29  ;;  %536 = vmatprep.subr.bf16.mxu0 %v599_v19 }
  0x11   :  { %552 = vmatprep.mubr.msk.bf16.mxu0 %vm600_vm2, %v599_v19 }
  0x13   :  { %511 = vmatpush3.bf16.msra.mxu1 %v562_v29 }
  0x14   :  { %512 = vmatprep.subr.bf16.mxu1 %v563_v30 }
  0x16   :  { %497 = vmatmul.mubr.msk.bf16.gmra.mrb[8].mxu1 %vm60_vm1, %v49_v24 }
  0x17   :  { %500 = vmatprep.mubr.msk.bf16.mxu1 %vm60_vm1, %v50_v25  ;;  %513 = vmatpush3.bf16.msra.mxu1 %v563_v30 }
  0x18   :  { %514 = vmatprep.subr.bf16.mxu1 %v564_v31 }
  0x1b   :  { %515 = vmatpush3.bf16.msra.mxu1 %v564_v31 }
  0x1c   :  { %516 = vmatprep.subr.bf16.mxu1 %v565_v32 }
  0x1e   :  { %501 = vmatmul.mubr.msk.bf16.gmra.mrb[12].mxu1 %vm60_vm1, %v51_v28 }
  0x1f   :  { %517 = vmatpush3.bf16.msra.mxu1 %v565_v32 }
  0x20   :  { %518 = vmatprep.subr.bf16.mxu1 %v566_v33 }
  0x23   :  { %519 = vmatpush3.bf16.msra.mxu1 %v566_v33 }
  0xd9   :  { %v490_v34 = vpop.f32.mrb[0].mxu1 }
  0xda   :  { %v123_v36 = vpop.f32.mrb[1].mxu1  ;;  %v132_v38 = vadd.f32 %v490_v34, %v434_v35 }
  0xdb   :  { %v491_v37 = vpop.f32.mrb[2].mxu1  ;;  %v124_v41 = vadd.f32 %v434_v35, %v123_v36 }
  0xdc   :  { %v135_v39 = vadd.f32 %v491_v37, %v434_v35  ;;  %v126_v40 = vpop.f32.mrb[3].mxu1 }
  0xdd   :  { %v127_v42 = vadd.f32 %v434_v35, %v126_v40 }
  0xde   :  { %v187_v43 = vpack.c.bf16 %v135_v39, %v132_v38 }
  0xdf   :  { %v186_v44 = vpack.c.bf16 %v127_v42, %v124_v41 }
  0xe1   :  { %567 = vtanh.bf16 %v186_v44  ;;  %v494_v45 = vpop.f32.mrb[4].mxu1 }
  0xe2   :  { %569 = vtanh.bf16 %v187_v43  ;;  %v148_v46 = vadd.f32 %v494_v45, %v434_v35  ;;  %v139_v47 = vpop.f32.mrb[5].mxu1 }
  0xe3   :  { %v140_v48 = vadd.f32 %v434_v35, %v139_v47  ;;  %v495_v49 = vpop.f32.mrb[6].mxu1 }
  0xe4   :  { %v151_v50 = vadd.f32 %v495_v49, %v434_v35  ;;  %v142_v51 = vpop.f32.mrb[7].mxu1 }
  0xe5   :  { %v143_v52 = vadd.f32 %v434_v35, %v142_v51 }
  0xe6   :  { %v189_v53 = vpack.c.bf16 %v151_v50, %v148_v46 }
  0xe7   :  { %v188_v54 = vpack.c.bf16 %v143_v52, %v140_v48 }
  0xe8   :  { %571 = vtanh.bf16 %v189_v53 }
  0xe9   :  { %573 = vtanh.bf16 %v188_v54  ;;  %v498_v55 = vpop.f32.mrb[8].mxu1 }
  0xea   :  { %v164_v56 = vadd.f32 %v498_v55, %v434_v35  ;;  %v155_v57 = vpop.f32.mrb[9].mxu1 }
  0xeb   :  { %v156_v58 = vadd.f32 %v434_v35, %v155_v57  ;;  %v499_v59 = vpop.f32.mrb[10].mxu1 }
  0xec   :  { %v568_v60 = vpop.eup %567  ;;  %v167_v61 = vadd.f32 %v499_v59, %v434_v35  ;;  %v158_v62 = vpop.f32.mrb[11].mxu1 }
  0xed   :  { %v570_v63 = vpop.eup %569  ;;  %520 = vmatprep.mubr.bf16.mxu1 %v568_v60  ;;  %v159_v0 = vadd.f32 %v434_v35, %v158_v62 }
  0xee   :  { %521 = vmatmul.mubr.bf16.vlgmr.msra.gmra.mrb[16].mxu1 %v570_v63  ;;  %v191_v1 = vpack.c.bf16 %v167_v61, %v164_v56 }
  0xef   :  { %v190_v2 = vpack.c.bf16 %v159_v0, %v156_v58 }
  0xf0   :  { %575 = vtanh.bf16 %v191_v1 }
  0xf1   :  { %577 = vtanh.bf16 %v190_v2  ;;  %v502_v3 = vpop.f32.mrb[12].mxu1 }
  0xf2   :  { %v180_v4 = vadd.f32 %v502_v3, %v434_v35  ;;  %v171_v5 = vpop.f32.mrb[13].mxu1 }
  0xf3   :  { %v572_v6 = vpop.eup %571  ;;  %v172_v7 = vadd.f32 %v434_v35, %v171_v5  ;;  %v503_v8 = vpop.f32.mrb[14].mxu1  ;;  %v386_v5 = vld [vmem:[%s753_s5] sm:$0x1] }
  0xf4   :  { %v574_v9 = vpop.eup %573  ;;  %v183_v10 = vadd.f32 %v503_v8, %v434_v35  ;;  %v174_v11 = vpop.f32.mrb[15].mxu1 }
  0xf5   :  { %524 = vmatprep.mubr.bf16.mxu1 %v574_v9  ;;  %v175_v12 = vadd.f32 %v434_v35, %v174_v11 }
  0xf6   :  { %525 = vmatmul.mubr.bf16.gmra.mrb[20].mxu1 %v572_v6  ;;  %v193_v13 = vpack.c.bf16 %v183_v10, %v180_v4  ;;  %v388_v6 = vstv %s754_s6 }
  0xf7   :  { %v192_v14 = vpack.c.bf16 %v175_v12, %v172_v7 }
  0xf8   :  { %579 = vtanh.bf16 %v193_v13 }
  0xf9   :  { %581 = vtanh.bf16 %v192_v14 }
  0xfb   :  { %v576_v15 = vpop.eup %575 }
  0xfc   :  { %v578_v16 = vpop.eup %577 }
  0xfd   :  { %528 = vmatprep.mubr.bf16.mxu1 %v578_v16 }
  0xfe   :  { %529 = vmatmul.mubr.bf16.gmra.mrb[24].mxu1 %v576_v15 }
 0x103   :  { %v580_v17 = vpop.eup %579 }
 0x104   :  { %v582_v18 = vpop.eup %581 }
 0x105   :  { %532 = vmatprep.mubr.bf16.mxu1 %v582_v18 }
 0x106   :  { %533 = vmatmul.mubr.bf16.gmra.mrb[28].mxu1 %v580_v17 }
 0x1c1   :  { %v522_v20 = vpop.f32.mrb[16].mxu1 }
 0x1c2   :  { %v307_v22 = vpop.f32.mrb[17].mxu1  ;;  %v316_v24 = vadd.f32 %v522_v20, %v443_v21 }
 0x1c3   :  { %v523_v23 = vpop.f32.mrb[18].mxu1  ;;  %v308_v27 = vadd.f32 %v443_v21, %v307_v22 }
 0x1c4   :  { %v319_v25 = vadd.f32 %v523_v23, %v443_v21  ;;  %v310_v26 = vpop.f32.mrb[19].mxu1 }
 0x1c5   :  { %v311_v28 = vadd.f32 %v443_v21, %v310_v26 }
 0x1c6   :  { %v371_v29 = vpack.c.bf16 %v319_v25, %v316_v24 }
 0x1c7   :  { %v370_v30 = vpack.c.bf16 %v311_v28, %v308_v27 }
 0x1c9   :  { %583 = vtanh.bf16 %v370_v30  ;;  %v526_v31 = vpop.f32.mrb[20].mxu1 }
 0x1ca   :  { %v332_v32 = vadd.f32 %v526_v31, %v443_v21  ;;  %v323_v33 = vpop.f32.mrb[21].mxu1  ;;  %585 = vtanh.bf16 %v371_v29 }
 0x1cb   :  { %v324_v34 = vadd.f32 %v443_v21, %v323_v33  ;;  %v527_v35 = vpop.f32.mrb[22].mxu1 }
 0x1cc   :  { %v335_v36 = vadd.f32 %v527_v35, %v443_v21  ;;  %v326_v37 = vpop.f32.mrb[23].mxu1 }
 0x1cd   :  { %v327_v38 = vadd.f32 %v443_v21, %v326_v37 }
 0x1ce   :  { %v373_v39 = vpack.c.bf16 %v335_v36, %v332_v32 }
 0x1cf   :  { %v372_v40 = vpack.c.bf16 %v327_v38, %v324_v34 }
 0x1d1   :  { %v530_v41 = vpop.f32.mrb[24].mxu1  ;;  %587 = vtanh.bf16 %v372_v40 }
 0x1d2   :  { %v348_v42 = vadd.f32 %v530_v41, %v443_v21  ;;  %v339_v43 = vpop.f32.mrb[25].mxu1  ;;  %589 = vtanh.bf16 %v373_v39 }
 0x1d3   :  { %v340_v44 = vadd.f32 %v443_v21, %v339_v43  ;;  %v531_v45 = vpop.f32.mrb[26].mxu1 }
 0x1d4   :  { %v584_v46 = vpop.eup %583  ;;  %v351_v47 = vadd.f32 %v531_v45, %v443_v21  ;;  %v342_v48 = vpop.f32.mrb[27].mxu1 }
 0x1d5   :  { %537 = vmatpush3.bf16.xpose.msra.mxu0 %v584_v46  ;;  %v343_v49 = vadd.f32 %v443_v21, %v342_v48  ;;  %v586_v57 = vpop.eup %585 }
 0x1d6   :  { %v375_v50 = vpack.c.bf16 %v351_v47, %v348_v42  ;;  %538 = vmatprep.subr.bf16.mxu0 %v599_v19 }
 0x1d7   :  { %v374_v51 = vpack.c.bf16 %v343_v49, %v340_v44 }
 0x1d9   :  { %v534_v52 = vpop.f32.mrb[28].mxu1  ;;  %591 = vtanh.bf16 %v374_v51 }
 0x1da   :  { %v364_v53 = vadd.f32 %v534_v52, %v443_v21  ;;  %v355_v54 = vpop.f32.mrb[29].mxu1  ;;  %593 = vtanh.bf16 %v375_v50 }
 0x1db   :  { %v356_v55 = vadd.f32 %v443_v21, %v355_v54  ;;  %v535_v56 = vpop.f32.mrb[30].mxu1 }
 0x1dc   :  { %v367_v58 = vadd.f32 %v535_v56, %v443_v21  ;;  %v358_v59 = vpop.f32.mrb[31].mxu1  ;;  %v588_v63 = vpop.eup %587 }
 0x1dd   :  { %539 = vmatpush3.bf16.xpose.msra.mxu0 %v586_v57  ;;  %v359_v60 = vadd.f32 %v443_v21, %v358_v59  ;;  %v590_v0 = vpop.eup %589 }
 0x1de   :  { %540 = vmatprep.subr.bf16.mxu0 %v599_v19  ;;  %v377_v61 = vpack.c.bf16 %v367_v58, %v364_v53 }
 0x1df   :  { %v376_v62 = vpack.c.bf16 %v359_v60, %v356_v55 }
 0x1e1   :  { %595 = vtanh.bf16 %v376_v62 }
 0x1e2   :  { %597 = vtanh.bf16 %v377_v61 }
 0x1e4   :  { %v592_v1 = vpop.eup %591 }
 0x1e5   :  { %541 = vmatpush3.bf16.xpose.msra.mxu0 %v588_v63  ;;  %v594_v2 = vpop.eup %593 }
 0x1e6   :  { %542 = vmatprep.subr.bf16.mxu0 %v599_v19 }
 0x1ec   :  { %v596_v3 = vpop.eup %595 }
 0x1ed   :  { %543 = vmatpush3.bf16.xpose.msra.mxu0 %v590_v0  ;;  %v598_v4 = vpop.eup %597 }
 0x1ee   :  { %544 = vmatprep.subr.bf16.mxu0 %v599_v19 }
 0x1f5   :  { %545 = vmatpush3.bf16.xpose.msra.mxu0 %v592_v1 }
 0x1f6   :  { %546 = vmatprep.subr.bf16.mxu0 %v599_v19 }
 0x1fd   :  { %547 = vmatpush3.bf16.xpose.msra.mxu0 %v594_v2 }
 0x1fe   :  { %548 = vmatprep.subr.bf16.mxu0 %v599_v19 }
 0x205   :  { %549 = vmatpush3.bf16.xpose.msra.mxu0 %v596_v3 }
 0x206   :  { %550 = vmatprep.subr.bf16.mxu0 %v599_v19 }
 0x20d   :  { %551 = vmatpush3.bf16.xpose.msra.mxu0 %v598_v4 }
 0x214   :  { %553 = vmatmul.mubr.bf16.vlgmr.msra.gmra.mrb[0].mxu0 %v386_v5 }
 0x2e7   :  { %v423_v7 = vpop.f32.mrb[0].mxu0 }
 0x2e8   :  { %v424_v8 = vadd.f32 %v423_v7, %v388_v6  ;;  %v554_v9 = vpop.f32.mrb[1].mxu0 }
 0x2e9   :  { %v426_v10 = vpop.f32.mrb[2].mxu0 }
 0x2ea   :  { %429 = vst [vmem:[%s755_s7] sm:$0x1] %v424_v8  ;;  %v555_v11 = vpop.f32.mrb[3].mxu0 }

</bundles_post_ra>
